<compile_context>
chip_gen: v7x
topology: tpu7x:2x2x1
jax: 0.10.0
libtpu: 0.0.40
codegen_flags: <defaults>
</compile_context>

<pallas_src>
import functools

import numpy as np
import jax
import jax.numpy as jnp
from jax.experimental import pallas as pl
from jax.experimental.pallas import tpu as pltpu

LANE = 128


def _round_up(a, b):
    return -(-a // b) * b


# ---------------------------------------------------------------------------
# Spherical (gnomonic) 3x3 sampling pattern — fixed geometry, computed once.
# TODO(synk): exact DeformConv2d_sphe offset generator (its GridGenerator) was
# not provided; this reproduces the standard gnomonic tangent-plane sampling
# pattern used by spherical deformable convs.
# ---------------------------------------------------------------------------
def _sphe_sampling_coords(H, W, kh=3, kw=3):
    """Returns float (row, col) sample coords, shape (H, W, kh*kw, 2)."""
    i = np.arange(H, dtype=np.float64)
    j = np.arange(W, dtype=np.float64)
    lat0 = (i + 0.5) / H * np.pi - np.pi / 2.0          # [-pi/2, pi/2]
    lon0 = (j + 0.5) / W * 2.0 * np.pi - np.pi          # [-pi, pi]
    dlat = np.pi / H
    dlon = 2.0 * np.pi / W
    ky, kx = np.meshgrid(np.arange(kh) - (kh - 1) / 2.0,
                         np.arange(kw) - (kw - 1) / 2.0, indexing="ij")
    K = kh * kw
    y = (ky.reshape(-1) * dlat)[None, None, :]           # (1,1,K) tangent-plane y
    x = (kx.reshape(-1) * dlon)[None, None, :]           # (1,1,K) tangent-plane x
    lat0b = lat0[:, None, None]                          # (H,1,1)
    lon0b = lon0[None, :, None]                          # (1,W,1)

    rho = np.sqrt(x ** 2 + y ** 2)
    nu = np.arctan(rho)
    rho_safe = np.where(rho == 0.0, 1.0, rho)
    lat = np.arcsin(np.clip(
        np.cos(nu) * np.sin(lat0b) + y * np.sin(nu) * np.cos(lat0b) / rho_safe,
        -1.0, 1.0))
    lon = lon0b + np.arctan2(
        x * np.sin(nu),
        rho_safe * np.cos(lat0b) * np.cos(nu) - y * np.sin(lat0b) * np.sin(nu))
    zero = (rho == 0.0)
    lat = np.where(zero, lat0b + 0.0 * lat, lat)
    lon = np.where(zero, lon0b + 0.0 * lon, lon)

    row = (lat + np.pi / 2.0) / np.pi * H - 0.5
    col = (lon + np.pi) / (2.0 * np.pi) * W - 0.5
    row = np.broadcast_to(row, (H, W, K))
    col = np.broadcast_to(col, (H, W, K))
    return np.stack([row, col], axis=-1).astype(np.float32)


@functools.lru_cache(maxsize=16)
def _sphe_gather_tables(H, W, kh=3, kw=3):
    """Static bilinear gather tables, computed once per (H, W).

    Returns:
      idx: (H*W, K, 4) int32 linear indices into the flattened H*W spatial dim
      wts: (H*W, K, 4) bf16 bilinear weights (zero for out-of-range corners
           -> matches deform_conv2d zero padding).
    """
    coords = _sphe_sampling_coords(H, W, kh, kw)
    K = kh * kw
    row = coords[..., 0].reshape(H * W, K).astype(np.float64)
    col = coords[..., 1].reshape(H * W, K).astype(np.float64)
    r0 = np.floor(row)
    c0 = np.floor(col)
    wr1 = row - r0
    wc1 = col - c0
    wr0 = 1.0 - wr1
    wc0 = 1.0 - wc1
    idxs, wgts = [], []
    for dr, dc, w in ((0, 0, wr0 * wc0), (0, 1, wr0 * wc1),
                      (1, 0, wr1 * wc0), (1, 1, wr1 * wc1)):
        r = r0 + dr
        c = c0 + dc
        valid = (r >= 0) & (r <= H - 1) & (c >= 0) & (c <= W - 1)
        ri = np.clip(r, 0, H - 1)
        ci = np.clip(c, 0, W - 1)
        idxs.append((ri * W + ci).astype(np.int32))
        wgts.append((w * valid).astype(np.float32))
    idx = np.stack(idxs, axis=-1)      # (H*W, K, 4)
    wts = np.stack(wgts, axis=-1)      # (H*W, K, 4)
    return jnp.asarray(idx), jnp.asarray(wts).astype(jnp.bfloat16)


# ---------------------------------------------------------------------------
# Bilinear-sampled im2col (XLA glue), channel-last, bf16 end-to-end.
# Restructured as 4 accumulating corner takes so the gather intermediate never
# materializes at f32 width (or at 4x the per-corner size).
# Patch column order is (tap, cin) to match the weight layout below.
# TODO(synk): the data-dependent gather itself stays in XLA; fusing it into
# the Pallas kernel would need an in-kernel gather / per-row DMA scheme.
# ---------------------------------------------------------------------------
def _sphe_im2col(x_flat3, idx, wts, out_dtype=jnp.bfloat16):
    """x_flat3: (N, H*W, C) -> patches (N*H*W, K*C)."""
    N, S, C = x_flat3.shape
    K = idx.shape[1]
    x = x_flat3.astype(jnp.bfloat16)
    p = None
    for corner in range(4):
        g = jnp.take(x, idx[:, :, corner].reshape(-1), axis=1)    # (N, S*K, C)
        g = g.reshape(N, S, K, C) * wts[None, :, :, corner, None]  # bf16
        p = g if p is None else p + g
    return p.reshape(N * S, K * C).astype(out_dtype)


# ---------------------------------------------------------------------------
# Pallas kernels: conv (as matmul, bf16 operands, f32 accumulate) + folded
# bias/BN affine, fused with ReLU (stage 1) or bf16 residual add (stage 2).
# Epilogue is deliberately tiny: the kernels are HBM-bound on v5e/v6e and the
# VPU work hides under the DMA / MXU on every generation.
# ---------------------------------------------------------------------------
def _conv_bn_relu_kernel(p_ref, w_ref, sc_ref, sh_ref, o_ref):
    acc = jnp.dot(p_ref[...], w_ref[...], preferred_element_type=jnp.float32)
    y = acc * sc_ref[...] + sh_ref[...]
    o_ref[...] = jnp.maximum(y, 0.0).astype(o_ref.dtype)


def _conv_bn_res_kernel(p_ref, w_ref, sc_ref, sh_ref, res_ref, o_ref):
    acc = jnp.dot(p_ref[...], w_ref[...], preferred_element_type=jnp.float32)
    y = acc * sc_ref[...] + sh_ref[...]
    o_ref[...] = (y + res_ref[...].astype(jnp.float32)).astype(o_ref.dtype)


def _vmem_capacity_bytes():
    """Per-TensorCore VMEM capacity; conservative (v7x-sized) fallback."""
    try:
        cap = getattr(pltpu.get_tpu_info(), "vmem_capacity_bytes", None)
        if cap:
            return int(cap)
    except Exception:
        pass
    return 64 << 20


def pallas_conv(patches, weight, scale, shift, residual=None,
                out_dtype=jnp.float32):
    """y[m, o] = relu_or_residual( (patches @ weight)[m, o] * scale + shift )."""
    M, Kp = patches.shape
    Cout = weight.shape[1]

    # Generation-aware VMEM numbers: v7x has 64 MiB/TC, v5e/v6e have 128 MiB.
    cap = _vmem_capacity_bytes()
    if cap > (96 << 20):                 # 128-MiB parts (v5e / v6e): go big
        budget, tm_target = 80 << 20, 1024
    else:                                # v7x-class: leave real headroom
        budget, tm_target = 26 << 20, 512

    # Per-row bytes of the double-buffered streams (patch in, out, residual).
    # The factor 2 IS the double-buffering; it is not counted again below.
    res_bytes = Cout * residual.dtype.itemsize if residual is not None else 0
    row_bytes = 2 * (Kp * patches.dtype.itemsize
                     + Cout * jnp.dtype(out_dtype).itemsize + res_bytes)

    # Row tile straight from the budget.  cdiv grid tolerates a ragged last
    # block (rows are independent; OOB output rows are dropped on store), so
    # there is no divide-exactly search and no full-M fallback.
    tm = min(tm_target, budget // max(row_bytes, 1))
    tm = max(16, (int(tm) // 16) * 16)
    if tm >= M:
        tm = M
    if M > 16 and pl.cdiv(M, tm) < 2:
        # v7x has 2 TensorCores: give the "parallel" axis at least 2 blocks.
        tm = min(M, _round_up(-(-M // 2), 16))
    grid = (pl.cdiv(M, tm),)

    in_specs = [
        pl.BlockSpec((tm, Kp), lambda i: (i, 0)),       # patch tile (bf16)
        # Resident operands (constant index_map -> DMA'd once per call).
        # TODO(synk): pipeline_mode=pl.Buffered(1) would drop their second
        # buffer (~1.2 MiB at C=256) but is not reliably lowered; skipped.
        pl.BlockSpec((Kp, Cout), lambda i: (0, 0)),     # weight (bf16)
        pl.BlockSpec((1, Cout), lambda i: (0, 0)),      # BN scale
        pl.BlockSpec((1, Cout), lambda i: (0, 0)),      # bias folded into shift
    ]
    args = [patches, weight, scale, shift]
    if residual is not None:
        in_specs.append(pl.BlockSpec((tm, Cout), lambda i: (i, 0)))  # bf16 skip
        args.append(residual)
        kernel = _conv_bn_res_kernel
    else:
        kernel = _conv_bn_relu_kernel

    resident_bytes = 2 * weight.size * weight.dtype.itemsize + 8 * Cout * 4
    vmem_need = tm * row_bytes + resident_bytes
    vmem_limit = int(min(max(vmem_need + (4 << 20), 32 << 20), (cap * 3) // 4))

    return pl.pallas_call(
        kernel,
        out_shape=jax.ShapeDtypeStruct((M, Cout), out_dtype),
        grid_spec=pltpu.PrefetchScalarGridSpec(
            num_scalar_prefetch=0,
            grid=grid,
            in_specs=in_specs,
            out_specs=pl.BlockSpec((tm, Cout), lambda i: (i, 0)),
        ),
        compiler_params=pltpu.CompilerParams(
            dimension_semantics=("parallel",),
            vmem_limit_bytes=vmem_limit),
    )(*args)


# ---------------------------------------------------------------------------
# Parameter prep (host-side, cheap): weight -> ((tap, cin), cout) matmul
# layout, conv bias folded into the BN shift (the reference module always uses
# bias=True), and ONLY the output-channel dim zero-padded to the lane width.
# ---------------------------------------------------------------------------
def _prep_layer(w_t, b_t, bn_params, C, Cout_pad, eps=1e-5):
    if bn_params is not None:
        gamma, beta, mean, var = bn_params
        sc = gamma / jnp.sqrt(var + eps)
        sh = beta - mean * sc
    else:
        sc = jnp.ones((C,), jnp.float32)
        sh = jnp.zeros((C,), jnp.float32)
    # (acc + b) * sc + sh  ==  acc * sc + (b * sc + sh)  -> no bias stream.
    sh = b_t * sc + sh

    Cout, Cin, Kh, Kw = w_t.shape
    w = jnp.transpose(w_t, (2, 3, 1, 0)).reshape(Kh * Kw * Cin, Cout)
    if Cout_pad != Cout:
        w = jnp.pad(w, ((0, 0), (0, Cout_pad - Cout)))
        sc = jnp.pad(sc, (0, Cout_pad - Cout))
        sh = jnp.pad(sh, (0, Cout_pad - Cout))
    return (w.astype(jnp.bfloat16),
            sc.reshape(1, Cout_pad).astype(jnp.float32),
            sh.reshape(1, Cout_pad).astype(jnp.float32))


# ---------------------------------------------------------------------------
# Full module forward: out = x + bn2(conv2(relu(bn1(conv1(relu(x))))))
# ---------------------------------------------------------------------------
def residual_conv_unit_sphe(x, params, bn=True):
    N, C, H, W = x.shape
    # Lane-dense OUTPUT channels only; Cin (gather / patch / MXU-K side) is
    # never padded.  Real MiDaS C=256 is untouched by either.
    Cout_pad = _round_up(C, LANE)

    bn1 = params.get("bn1") if bn else None
    bn2 = params.get("bn2") if bn else None
    w1, sc1, sh1 = _prep_layer(params["w1"], params["b1"], bn1, C, Cout_pad)
    w2, sc2, sh2 = _prep_layer(params["w2"], params["b2"], bn2, C, Cout_pad)
    idx, wts = _sphe_gather_tables(H, W)

    # NCHW -> NHWC once.  TODO(synk): hoist if neighbours run channel-last.
    x_nhwc = jnp.transpose(x, (0, 2, 3, 1))
    S = H * W
    M = N * S
    x_flat3 = x_nhwc.reshape(N, S, C)

    # Residual skip, streamed in bf16, zero-padded to the lane-dense Cout.
    res = x_flat3.reshape(M, C).astype(jnp.bfloat16)
    if Cout_pad != C:
        res = jnp.pad(res, ((0, 0), (0, Cout_pad - C)))

    # activation(x) before conv1; bf16 operands for the gather + MXU.
    act0 = jnp.maximum(x_flat3, 0.0).astype(jnp.bfloat16)
    p1 = _sphe_im2col(act0, idx, wts)                       # (M, 9*C) bf16
    # conv1 + bias/bn1 + relu (fused); intermediate kept in bf16.
    y1 = pallas_conv(p1, w1, sc1, sh1, out_dtype=jnp.bfloat16)
    if Cout_pad != C:
        y1 = y1[:, :C]                                      # drop pad channels
    p2 = _sphe_im2col(y1.reshape(N, S, C), idx, wts)        # (M, 9*C) bf16
    # conv2 + bias/bn2 + skip add (fused).
    y2 = pallas_conv(p2, w2, sc2, sh2, residual=res, out_dtype=jnp.float32)

    out = y2.reshape(N, H, W, Cout_pad)[..., :C]
    return jnp.transpose(out, (0, 3, 1, 2))                 # back to NCHW


if __name__ == "__main__":
    key = jax.random.PRNGKey(0)
    kw1, kb1, kw2, kb2, kx = jax.random.split(key, 5)

    N, C, H, W = 2, 4, 16, 16
    params = {
        # torch layouts: weight (Cout, Cin, Kh, Kw), bias (Cout,)
        "w1": jax.random.normal(kw1, (C, C, 3, 3), jnp.float32) * 0.1,
        "b1": jax.random.normal(kb1, (C,), jnp.float32) * 0.01,
        "w2": jax.random.normal(kw2, (C, C, 3, 3), jnp.float32) * 0.1,
        "b2": jax.random.normal(kb2, (C,), jnp.float32) * 0.01,
        # BatchNorm eval-mode params: gamma, beta, running_mean, running_var
        "bn1": (jnp.ones((C,), jnp.float32), jnp.zeros((C,), jnp.float32),
                jnp.zeros((C,), jnp.float32), jnp.ones((C,), jnp.float32)),
        "bn2": (jnp.ones((C,), jnp.float32), jnp.zeros((C,), jnp.float32),
                jnp.zeros((C,), jnp.float32), jnp.ones((C,), jnp.float32)),
    }

    x = jax.random.normal(kx, (N, C, H, W), jnp.float32)

    fwd = jax.jit(functools.partial(residual_conv_unit_sphe, bn=True))
    out = jax.block_until_ready(fwd(x, params))
    assert out.shape == (N, C, H, W)
    assert bool(jnp.all(jnp.isfinite(out)))
    print("KERNEL_OK")
</pallas_src>

<mosaic_0001>
module attributes {stable_mosaic.version = 11 : i64} {
  func.func @_conv_bn_relu_kernel(%arg0: i32, %arg1: memref<256x36xbf16, #tpu.memory_space<vmem>>, %arg2: memref<36x128xbf16, #tpu.memory_space<vmem>>, %arg3: memref<1x128xf32, #tpu.memory_space<vmem>>, %arg4: memref<1x128xf32, #tpu.memory_space<vmem>>, %arg5: memref<256x128xbf16, #tpu.memory_space<vmem>>) attributes {dimension_semantics = [#tpu.dimension_semantics<parallel>], iteration_bounds = array<i64: 2>, scalar_prefetch = 0 : i64, scratch_operands = 0 : i64, tpu.core_type = #tpu.core_type<tc>, window_params = [{transform_indices = @transform_0, window_bounds = array<i64: 256, 36>}, {pipeline_mode = #tpu.pipeline_mode<synchronous>, transform_indices = @transform_1, window_bounds = array<i64: 36, 128>}, {pipeline_mode = #tpu.pipeline_mode<synchronous>, transform_indices = @transform_2, window_bounds = array<i64: 1, 128>}, {pipeline_mode = #tpu.pipeline_mode<synchronous>, transform_indices = @transform_3, window_bounds = array<i64: 1, 128>}, {transform_indices = @transform_4, window_bounds = array<i64: 256, 128>}]} {
    %c0 = arith.constant 0 : index
    %c0_0 = arith.constant 0 : index
    %0 = vector.load %arg1[%c0, %c0_0] : memref<256x36xbf16, #tpu.memory_space<vmem>>, vector<256x36xbf16>
    %c0_1 = arith.constant 0 : index
    %c0_2 = arith.constant 0 : index
    %1 = vector.load %arg2[%c0_1, %c0_2] : memref<36x128xbf16, #tpu.memory_space<vmem>>, vector<36x128xbf16>
    %cst = arith.constant dense<0.000000e+00> : vector<256x128xf32>
    %2 = tpu.matmul %0, %1, %cst {dimension_numbers = #tpu.dot_dimension_numbers<[1], [0], [0], [1], [0, 0, 1, 1], [], []>} : vector<256x36xbf16>, vector<36x128xbf16>, vector<256x128xf32> -> vector<256x128xf32>
    %c0_3 = arith.constant 0 : index
    %c0_4 = arith.constant 0 : index
    %3 = vector.load %arg3[%c0_3, %c0_4] : memref<1x128xf32, #tpu.memory_space<vmem>>, vector<1x128xf32>
    %4 = vector.broadcast %3 : vector<1x128xf32> to vector<256x128xf32>
    %5 = arith.mulf %2, %4 : vector<256x128xf32>
    %c0_5 = arith.constant 0 : index
    %c0_6 = arith.constant 0 : index
    %6 = vector.load %arg4[%c0_5, %c0_6] : memref<1x128xf32, #tpu.memory_space<vmem>>, vector<1x128xf32>
    %7 = vector.broadcast %6 : vector<1x128xf32> to vector<256x128xf32>
    %8 = arith.addf %5, %7 : vector<256x128xf32>
    %cst_7 = arith.constant 0.000000e+00 : f32
    %9 = vector.broadcast %cst_7 : f32 to vector<256x128xf32>
    %10 = arith.maximumf %8, %9 : vector<256x128xf32>
    %11 = arith.truncf %10 : vector<256x128xf32> to vector<256x128xbf16>
    %c0_8 = arith.constant 0 : index
    %c0_9 = arith.constant 0 : index
    %12 = vector.load %arg5[%c0_8, %c0_9] : memref<256x128xbf16, #tpu.memory_space<vmem>>, vector<256x128xbf16>
    tpu.vector_store %arg5[%c0_8, %c0_9], %11 {strides = array<i32>} : memref<256x128xbf16, #tpu.memory_space<vmem>>, vector<256x128xbf16>,
    return
  }
  func.func @transform_0(%arg0: i32) -> (i32, i32) {
    %c0_i32 = arith.constant 0 : i32
    %c0_i32_0 = arith.constant 0 : i32
    return %arg0, %c0_i32 : i32, i32
  }
  func.func @transform_1(%arg0: i32) -> (i32, i32) {
    %c0_i32 = arith.constant 0 : i32
    %c0_i32_0 = arith.constant 0 : i32
    %c0_i32_1 = arith.constant 0 : i32
    return %c0_i32, %c0_i32_0 : i32, i32
  }
  func.func @transform_2(%arg0: i32) -> (i32, i32) {
    %c0_i32 = arith.constant 0 : i32
    %c0_i32_0 = arith.constant 0 : i32
    %c0_i32_1 = arith.constant 0 : i32
    return %c0_i32, %c0_i32_0 : i32, i32
  }
  func.func @transform_3(%arg0: i32) -> (i32, i32) {
    %c0_i32 = arith.constant 0 : i32
    %c0_i32_0 = arith.constant 0 : i32
    %c0_i32_1 = arith.constant 0 : i32
    return %c0_i32, %c0_i32_0 : i32, i32
  }
  func.func @transform_4(%arg0: i32) -> (i32, i32) {
    %c0_i32 = arith.constant 0 : i32
    %c0_i32_0 = arith.constant 0 : i32
    return %arg0, %c0_i32 : i32, i32
  }
}

module attributes {stable_mosaic.version = 11 : i64} {
  func.func @_conv_bn_res_kernel(%arg0: i32, %arg1: memref<256x36xbf16, #tpu.memory_space<vmem>>, %arg2: memref<36x128xbf16, #tpu.memory_space<vmem>>, %arg3: memref<1x128xf32, #tpu.memory_space<vmem>>, %arg4: memref<1x128xf32, #tpu.memory_space<vmem>>, %arg5: memref<256x128xbf16, #tpu.memory_space<vmem>>, %arg6: memref<256x128xf32, #tpu.memory_space<vmem>>) attributes {dimension_semantics = [#tpu.dimension_semantics<parallel>], iteration_bounds = array<i64: 2>, scalar_prefetch = 0 : i64, scratch_operands = 0 : i64, tpu.core_type = #tpu.core_type<tc>, window_params = [{transform_indices = @transform_0, window_bounds = array<i64: 256, 36>}, {pipeline_mode = #tpu.pipeline_mode<synchronous>, transform_indices = @transform_1, window_bounds = array<i64: 36, 128>}, {pipeline_mode = #tpu.pipeline_mode<synchronous>, transform_indices = @transform_2, window_bounds = array<i64: 1, 128>}, {pipeline_mode = #tpu.pipeline_mode<synchronous>, transform_indices = @transform_3, window_bounds = array<i64: 1, 128>}, {transform_indices = @transform_4, window_bounds = array<i64: 256, 128>}, {transform_indices = @transform_5, window_bounds = array<i64: 256, 128>}]} {
    %c0 = arith.constant 0 : index
    %c0_0 = arith.constant 0 : index
    %0 = vector.load %arg1[%c0, %c0_0] : memref<256x36xbf16, #tpu.memory_space<vmem>>, vector<256x36xbf16>
    %c0_1 = arith.constant 0 : index
    %c0_2 = arith.constant 0 : index
    %1 = vector.load %arg2[%c0_1, %c0_2] : memref<36x128xbf16, #tpu.memory_space<vmem>>, vector<36x128xbf16>
    %cst = arith.constant dense<0.000000e+00> : vector<256x128xf32>
    %2 = tpu.matmul %0, %1, %cst {dimension_numbers = #tpu.dot_dimension_numbers<[1], [0], [0], [1], [0, 0, 1, 1], [], []>} : vector<256x36xbf16>, vector<36x128xbf16>, vector<256x128xf32> -> vector<256x128xf32>
    %c0_3 = arith.constant 0 : index
    %c0_4 = arith.constant 0 : index
    %3 = vector.load %arg3[%c0_3, %c0_4] : memref<1x128xf32, #tpu.memory_space<vmem>>, vector<1x128xf32>
    %4 = vector.broadcast %3 : vector<1x128xf32> to vector<256x128xf32>
    %5 = arith.mulf %2, %4 : vector<256x128xf32>
    %c0_5 = arith.constant 0 : index
    %c0_6 = arith.constant 0 : index
    %6 = vector.load %arg4[%c0_5, %c0_6] : memref<1x128xf32, #tpu.memory_space<vmem>>, vector<1x128xf32>
    %7 = vector.broadcast %6 : vector<1x128xf32> to vector<256x128xf32>
    %8 = arith.addf %5, %7 : vector<256x128xf32>
    %c0_7 = arith.constant 0 : index
    %c0_8 = arith.constant 0 : index
    %9 = vector.load %arg5[%c0_7, %c0_8] : memref<256x128xbf16, #tpu.memory_space<vmem>>, vector<256x128xbf16>
    %10 = arith.extf %9 : vector<256x128xbf16> to vector<256x128xf32>
    %11 = arith.addf %8, %10 : vector<256x128xf32>
    %c0_9 = arith.constant 0 : index
    %c0_10 = arith.constant 0 : index
    %12 = vector.load %arg6[%c0_9, %c0_10] : memref<256x128xf32, #tpu.memory_space<vmem>>, vector<256x128xf32>
    tpu.vector_store %arg6[%c0_9, %c0_10], %11 {strides = array<i32>} : memref<256x128xf32, #tpu.memory_space<vmem>>, vector<256x128xf32>,
    return
  }
  func.func @transform_0(%arg0: i32) -> (i32, i32) {
    %c0_i32 = arith.constant 0 : i32
    %c0_i32_0 = arith.constant 0 : i32
    return %arg0, %c0_i32 : i32, i32
  }
  func.func @transform_1(%arg0: i32) -> (i32, i32) {
    %c0_i32 = arith.constant 0 : i32
    %c0_i32_0 = arith.constant 0 : i32
    %c0_i32_1 = arith.constant 0 : i32
    return %c0_i32, %c0_i32_0 : i32, i32
  }
  func.func @transform_2(%arg0: i32) -> (i32, i32) {
    %c0_i32 = arith.constant 0 : i32
    %c0_i32_0 = arith.constant 0 : i32
    %c0_i32_1 = arith.constant 0 : i32
    return %c0_i32, %c0_i32_0 : i32, i32
  }
  func.func @transform_3(%arg0: i32) -> (i32, i32) {
    %c0_i32 = arith.constant 0 : i32
    %c0_i32_0 = arith.constant 0 : i32
    %c0_i32_1 = arith.constant 0 : i32
    return %c0_i32, %c0_i32_0 : i32, i32
  }
  func.func @transform_4(%arg0: i32) -> (i32, i32) {
    %c0_i32 = arith.constant 0 : i32
    %c0_i32_0 = arith.constant 0 : i32
    return %arg0, %c0_i32 : i32, i32
  }
  func.func @transform_5(%arg0: i32) -> (i32, i32) {
    %c0_i32 = arith.constant 0 : i32
    %c0_i32_0 = arith.constant 0 : i32
    return %arg0, %c0_i32 : i32, i32
  }
}

</mosaic_0001>

<bundles_post_ra>
// kernel: residual_conv_unit_sphe.2
= control target key start
LH: loop header
LB: loop body
LE: loop exit
PB: predicated region body
PF: predicated region fallthrough
CT: control target
= control target key end

     0   :  { %s1206_s15 = smov 0   ;;  %s1365_s0 = inlined_call_operand.vmem [shape: bf16[512,36], index: 0, kind: input, shape index: {}]   ;;  %s1366_s1 = inlined_call_operand.vmem [shape: bf16[36,128], index: 1, kind: input, shape index: {}]   ;;  %s1367_s2 = inlined_call_operand.vmem [shape: f32[1,128], index: 2, kind: input, shape index: {}]   ;;  %s1368_s3 = inlined_call_operand.vmem [shape: f32[1,128], index: 3, kind: input, shape index: {}]   ;;  %s1369_s4 = inlined_call_operand.vmem [shape: bf16[512,128], index: 4, kind: output, shape index: {}]  }
   0x1 LB: > { %s874_s16 = sadd.s32 4294967295, %s1179_s15   ;;  %p878_p0 = scmp.ge.s32.totalorder %s1179_s15, 1  ;;  %s1179_s15 = sphi %s1206_s15, %s14_s15  }
   0x2   : > { %p163_p1 = scmp.lt.s32.totalorder %s1179_s15, 3 }
   0x4   : > { %p164_p2 = pnand %p878_p0, %p163_p1 }
   0x5   : > { %v1154_v0 = vld [vmem:[%s1366_s1] sm:$0xff] (!%p164_p2)   ;;  %v1155_v1 = vld [vmem:[%s1366_s1 + $0x8] sm:$0xff] (!%p164_p2)   ;;  %s879_s21 = sshll.u32 (!%p164_p2), %s874_s16, 5  ;;  %v1156_v2 = vld [vmem:[%s1366_s1 + $0x10] ss:$0 sps:$4 sm:$0x33] (!%p164_p2)  }
   0x6   : > { %167 = sbr.rel (%p164_p2) target bundleno = 268 (0x10c), region = 36  ;;  %1100 = vmatprep.subr.bf16.mxu0 (!%p164_p2), %v1154_v0  ;;  %1138 = vmatprep.subr.bf16.mxu1 (!%p164_p2), %v1154_v0  ;;  %p190_p3 = scmp.lt.s32.totalorder (!%p164_p2), %s879_s21, 63  ;;  %vm383_vm0 = vcmask (!%p164_p2), 1041408   ;;  %vm334_vm1 = vcmask (!%p164_p2), 293888   ;;  %v1268_v20 = vld [vmem:[%s1367_s2] ss:$0 sm:$0xff] (!%p164_p2) }
   0x7   : > { %1101 = vmatpush3.bf16.msra.mxu0 (!%p164_p2), %v1154_v0  ;;  %1141 = vmatpush3.bf16.msra.mxu1 (!%p164_p2), %v1154_v0  ;;  %v385_v3 = vsel (!%p164_p2), %vm383_vm0, %v1156_v2, 0  ;;  %v1273_v22 = vld [vmem:[%s1368_s3] ss:$0 sm:$0xff] (!%p164_p2) }
   0x8   : > { %1102 = vmatprep.subr.bf16.mxu0 (!%p164_p2), %v1155_v1  ;;  %1139 = vmatprep.subr.bf16.mxu1 (!%p164_p2), %v1155_v1 }
   0xb   : > { %1103 = vmatpush3.bf16.msra.mxu0 (!%p164_p2), %v1155_v1  ;;  %1142 = vmatpush3.bf16.msra.mxu1 (!%p164_p2), %v1155_v1 }
   0xc   : > { %1144 = vmatprep.subr.msk.bf16.mxu0 (!%p164_p2), %vm383_vm0, %v1156_v2  ;;  %1145 = vmatprep.subr.msk.bf16.mxu1 (!%p164_p2), %vm383_vm0, %v1156_v2 }
   0xd   : > { %s1371_s21 = smov (!%p190_p3, %s879_s21), 63 }
   0xe   : > { %s880_s24 = sshll.u32 %s1371_s21, 2 }
   0xf   : > { %s1231_s27 = scalar_lea.vmem %s1365_s0, %s880_s24  ;;  %1105 = vmatpush3.bf16.msra.mxu0 %v385_v3  ;;  %1143 = vmatpush3.bf16.msra.mxu1 %v385_v3  ;;  %s1296_s8 = scalar_lea.vmem %s1369_s4, %s880_s24 }
  0x10   : > { %v1157_v4 = vld [vmem:[%s1231_s27] sm:$0xff]   ;;  %v1159_v6 = vld [vmem:[%s1231_s27 + $0x8] sm:$0xff]   ;;  %v1161_v8 = vld [vmem:[%s1231_s27 + $0x10] sm:$0xff]  }
  0x11   : > { %v1158_v5 = vld [vmem:[%s1231_s27 + $0x40] sm:$0xff]   ;;  %1106 = vmatprep.mubr.msk.bf16.mxu0 %vm334_vm1, %v1157_v4  ;;  %v1160_v7 = vld [vmem:[%s1231_s27 + $0x48] sm:$0xff]   ;;  %v1162_v9 = vld [vmem:[%s1231_s27 + $0x50] sm:$0xff]  }
  0x12   : > { %1122 = vmatprep.mubr.msk.bf16.mxu1 %vm334_vm1, %v1158_v5  ;;  %1107 = vmatmul.mubr.msk.bf16.vlgmr.msra.gmra.mrb[0].mxu0 %vm334_vm1, %v1159_v6  ;;  %v1163_v10 = vld [vmem:[%s1231_s27 + $0x18] sm:$0xff]   ;;  %v1165_v12 = vld [vmem:[%s1231_s27 + $0x20] sm:$0xff]   ;;  %v1167_v14 = vld [vmem:[%s1231_s27 + $0x28] sm:$0xff]  }
  0x13   : > { %1123 = vmatmul.mubr.msk.bf16.vlgmr.msra.gmra.mrb[0].mxu1 %vm334_vm1, %v1160_v7  ;;  %1110 = vmatprep.mubr.msk.bf16.mxu0 %vm334_vm1, %v1161_v8  ;;  %v1164_v11 = vld [vmem:[%s1231_s27 + $0x58] sm:$0xff]   ;;  %v1166_v13 = vld [vmem:[%s1231_s27 + $0x60] sm:$0xff]   ;;  %v1168_v15 = vld [vmem:[%s1231_s27 + $0x68] sm:$0xff]  }
  0x14   : > { %1126 = vmatprep.mubr.msk.bf16.mxu1 %vm334_vm1, %v1162_v9  ;;  %v1169_v16 = vld [vmem:[%s1231_s27 + $0x30] sm:$0xff]   ;;  %v1171_v18 = vld [vmem:[%s1231_s27 + $0x38] sm:$0xff]  }
  0x15   : > { %v1170_v17 = vld [vmem:[%s1231_s27 + $0x70] sm:$0xff]   ;;  %v1172_v19 = vld [vmem:[%s1231_s27 + $0x78] sm:$0xff]  }
  0x1a   : > { %1111 = vmatmul.mubr.msk.bf16.gmra.mrb[4].mxu0 %vm334_vm1, %v1163_v10 }
  0x1b   : > { %1127 = vmatmul.mubr.msk.bf16.gmra.mrb[4].mxu1 %vm334_vm1, %v1164_v11  ;;  %1114 = vmatprep.mubr.msk.bf16.mxu0 %vm334_vm1, %v1165_v12 }
  0x1c   : > { %1130 = vmatprep.mubr.msk.bf16.mxu1 %vm334_vm1, %v1166_v13 }
  0x22   : > { %1115 = vmatmul.mubr.msk.bf16.gmra.mrb[8].mxu0 %vm334_vm1, %v1167_v14 }
  0x23   : > { %1131 = vmatmul.mubr.msk.bf16.gmra.mrb[8].mxu1 %vm334_vm1, %v1168_v15  ;;  %1118 = vmatprep.mubr.msk.bf16.mxu0 %vm334_vm1, %v1169_v16 }
  0x24   : > { %1134 = vmatprep.mubr.msk.bf16.mxu1 %vm334_vm1, %v1170_v17 }
  0x2a   : > { %1119 = vmatmul.mubr.msk.bf16.gmra.mrb[12].mxu0 %vm334_vm1, %v1171_v18 }
  0x2b   : > { %1135 = vmatmul.mubr.msk.bf16.gmra.mrb[12].mxu1 %vm334_vm1, %v1172_v19 }
  0xe5   : > { %v1108_v21 = vpop.f32.mrb[0].mxu0 }
  0xe6   : > { %v1124_v23 = vpop.f32.mrb[0].mxu1  ;;  %v557_v24 = vmul.f32 %v1108_v21, %v1268_v20  ;;  %v421_v26 = vpop.f32.mrb[1].mxu0 }
  0xe7   : > { %v573_v25 = vmul.f32 %v1124_v23, %v1268_v20  ;;  %v485_v27 = vpop.f32.mrb[1].mxu1  ;;  %v555_v28 = vmul.f32 %v1268_v20, %v421_v26  ;;  %v1109_v30 = vpop.f32.mrb[2].mxu0 }
  0xe8   : > { %v571_v29 = vmul.f32 %v1268_v20, %v485_v27  ;;  %v1125_v31 = vpop.f32.mrb[2].mxu1  ;;  %v596_v32 = vadd.f32 %v1273_v22, %v557_v24  ;;  %v558_v34 = vmul.f32 %v1109_v30, %v1268_v20  ;;  %v424_v36 = vpop.f32.mrb[3].mxu0 }
  0xe9   : > { %v612_v33 = vadd.f32 %v1273_v22, %v573_v25  ;;  %v574_v35 = vmul.f32 %v1125_v31, %v1268_v20  ;;  %v488_v37 = vpop.f32.mrb[3].mxu1  ;;  %v594_v38 = vadd.f32 %v1273_v22, %v555_v28  ;;  %v556_v40 = vmul.f32 %v1268_v20, %v424_v36 }
  0xea   : > { %v610_v39 = vadd.f32 %v1273_v22, %v571_v29  ;;  %v572_v41 = vmul.f32 %v1268_v20, %v488_v37  ;;  %v597_v42 = vadd.f32 %v1273_v22, %v558_v34  ;;  %v628_v46 = vmax.f32 %v596_v32, 0.0 }
  0xeb   : > { %v613_v43 = vadd.f32 %v1273_v22, %v574_v35  ;;  %v595_v44 = vadd.f32 %v1273_v22, %v556_v40  ;;  %v644_v47 = vmax.f32 %v612_v33, 0.0  ;;  %v626_v50 = vmax.f32 %v594_v38, 0.0 }
  0xec   : > { %v611_v45 = vadd.f32 %v1273_v22, %v572_v41  ;;  %v629_v48 = vmax.f32 %v597_v42, 0.0  ;;  %v642_v51 = vmax.f32 %v610_v39, 0.0 }
  0xed   : > { %v645_v49 = vmax.f32 %v613_v43, 0.0  ;;  %v627_v52 = vmax.f32 %v595_v44, 0.0  ;;  %v1112_v54 = vpop.f32.mrb[4].mxu0 }
  0xee   : > { %v643_v53 = vmax.f32 %v611_v45, 0.0  ;;  %v1128_v55 = vpop.f32.mrb[4].mxu1  ;;  %v994_v56 = vpack.c.bf16 %v629_v48, %v628_v46  ;;  %v561_v58 = vmul.f32 %v1112_v54, %v1268_v20  ;;  %v437_v60 = vpop.f32.mrb[5].mxu0 }
  0xef   : > { %v1034_v57 = vpack.c.bf16 %v645_v49, %v644_v47  ;;  %v577_v59 = vmul.f32 %v1128_v55, %v1268_v20  ;;  %v501_v61 = vpop.f32.mrb[5].mxu1  ;;  %v989_v62 = vpack.c.bf16 %v627_v52, %v626_v50  ;;  %v559_v0 = vmul.f32 %v1268_v20, %v437_v60  ;;  %v1113_v2 = vpop.f32.mrb[6].mxu0 }
  0xf0   : > { %v1029_v63 = vpack.c.bf16 %v643_v53, %v642_v51  ;;  %v575_v1 = vmul.f32 %v1268_v20, %v501_v61  ;;  %v1129_v3 = vpop.f32.mrb[6].mxu1  ;;  %1066 = vst [vmem:[%s1296_s8 + $0x8] sm:$0xff] %v994_v56   ;;  %v600_v4 = vadd.f32 %v1273_v22, %v561_v58  ;;  %v562_v6 = vmul.f32 %v1113_v2, %v1268_v20  ;;  %v440_v8 = vpop.f32.mrb[7].mxu0 }
  0xf1   : > { %1074 = vst [vmem:[%s1296_s8 + $0x48] sm:$0xff] %v1034_v57   ;;  %v616_v5 = vadd.f32 %v1273_v22, %v577_v59  ;;  %v578_v7 = vmul.f32 %v1129_v3, %v1268_v20  ;;  %v504_v9 = vpop.f32.mrb[7].mxu1  ;;  %990 = vst [vmem:[%s1296_s8] sm:$0xff] %v989_v62   ;;  %v598_v10 = vadd.f32 %v1273_v22, %v559_v0 }
  0xf2   : > { %1073 = vst [vmem:[%s1296_s8 + $0x40] sm:$0xff] %v1029_v63   ;;  %v614_v11 = vadd.f32 %v1273_v22, %v575_v1  ;;  %v560_v12 = vmul.f32 %v1268_v20, %v440_v8  ;;  %v576_v13 = vmul.f32 %v1268_v20, %v504_v9  ;;  %v601_v14 = vadd.f32 %v1273_v22, %v562_v6 }
  0xf3   : > { %v617_v15 = vadd.f32 %v1273_v22, %v578_v7  ;;  %v632_v18 = vmax.f32 %v600_v4, 0.0  ;;  %v648_v19 = vmax.f32 %v616_v5, 0.0  ;;  %v630_v24 = vmax.f32 %v598_v10, 0.0 }
  0xf4   : > { %v599_v16 = vadd.f32 %v1273_v22, %v560_v12  ;;  %v615_v17 = vadd.f32 %v1273_v22, %v576_v13  ;;  %v633_v21 = vmax.f32 %v601_v14, 0.0  ;;  %v646_v25 = vmax.f32 %v614_v11, 0.0 }
  0xf5   : > { %v649_v23 = vmax.f32 %v617_v15, 0.0  ;;  %v1116_v28 = vpop.f32.mrb[8].mxu0 }
  0xf6   : > { %v631_v26 = vmax.f32 %v599_v16, 0.0  ;;  %v647_v27 = vmax.f32 %v615_v17, 0.0  ;;  %v1132_v29 = vpop.f32.mrb[8].mxu1  ;;  %v1004_v30 = vpack.c.bf16 %v633_v21, %v632_v18  ;;  %v565_v32 = vmul.f32 %v1116_v28, %v1268_v20  ;;  %v453_v34 = vpop.f32.mrb[9].mxu0 }
  0xf7   : > { %v1044_v31 = vpack.c.bf16 %v649_v23, %v648_v19  ;;  %v581_v33 = vmul.f32 %v1132_v29, %v1268_v20  ;;  %v517_v35 = vpop.f32.mrb[9].mxu1  ;;  %v563_v38 = vmul.f32 %v1268_v20, %v453_v34  ;;  %v1117_v40 = vpop.f32.mrb[10].mxu0 }
  0xf8   : > { %v999_v36 = vpack.c.bf16 %v631_v26, %v630_v24  ;;  %v1039_v37 = vpack.c.bf16 %v647_v27, %v646_v25  ;;  %v579_v39 = vmul.f32 %v1268_v20, %v517_v35  ;;  %v1133_v41 = vpop.f32.mrb[10].mxu1  ;;  %1068 = vst [vmem:[%s1296_s8 + $0x18] sm:$0xff] %v1004_v30   ;;  %v604_v42 = vadd.f32 %v1273_v22, %v565_v32  ;;  %v456_v46 = vpop.f32.mrb[11].mxu0 }
  0xf9   : > { %1076 = vst [vmem:[%s1296_s8 + $0x58] sm:$0xff] %v1044_v31   ;;  %v620_v43 = vadd.f32 %v1273_v22, %v581_v33  ;;  %v566_v44 = vmul.f32 %v1117_v40, %v1268_v20  ;;  %v582_v45 = vmul.f32 %v1133_v41, %v1268_v20  ;;  %v520_v47 = vpop.f32.mrb[11].mxu1  ;;  %v602_v48 = vadd.f32 %v1273_v22, %v563_v38 }
  0xfa   : > { %1067 = vst [vmem:[%s1296_s8 + $0x10] sm:$0xff] %v999_v36   ;;  %1075 = vst [vmem:[%s1296_s8 + $0x50] sm:$0xff] %v1039_v37   ;;  %v618_v49 = vadd.f32 %v1273_v22, %v579_v39  ;;  %v564_v50 = vmul.f32 %v1268_v20, %v456_v46  ;;  %v580_v51 = vmul.f32 %v1268_v20, %v520_v47  ;;  %v636_v56 = vmax.f32 %v604_v42, 0.0 }
  0xfb   : > { %v605_v52 = vadd.f32 %v1273_v22, %v566_v44  ;;  %v621_v53 = vadd.f32 %v1273_v22, %v582_v45  ;;  %v652_v57 = vmax.f32 %v620_v43, 0.0  ;;  %v634_v60 = vmax.f32 %v602_v48, 0.0 }
  0xfc   : > { %v603_v54 = vadd.f32 %v1273_v22, %v564_v50  ;;  %v619_v55 = vadd.f32 %v1273_v22, %v580_v51  ;;  %v650_v61 = vmax.f32 %v618_v49, 0.0 }
  0xfd   : > { %v637_v58 = vmax.f32 %v605_v52, 0.0  ;;  %v653_v59 = vmax.f32 %v621_v53, 0.0  ;;  %v1120_v0 = vpop.f32.mrb[12].mxu0 }
  0xfe   : > { %v635_v62 = vmax.f32 %v603_v54, 0.0  ;;  %v651_v63 = vmax.f32 %v619_v55, 0.0  ;;  %v1136_v1 = vpop.f32.mrb[12].mxu1  ;;  %v569_v4 = vmul.f32 %v1120_v0, %v1268_v20  ;;  %v469_v6 = vpop.f32.mrb[13].mxu0 }
  0xff   : > { %v1014_v2 = vpack.c.bf16 %v637_v58, %v636_v56  ;;  %v1054_v3 = vpack.c.bf16 %v653_v59, %v652_v57  ;;  %v585_v5 = vmul.f32 %v1136_v1, %v1268_v20  ;;  %v533_v7 = vpop.f32.mrb[13].mxu1  ;;  %v567_v10 = vmul.f32 %v1268_v20, %v469_v6  ;;  %v1121_v12 = vpop.f32.mrb[14].mxu0 }
 0x100   : > { %v1009_v8 = vpack.c.bf16 %v635_v62, %v634_v60  ;;  %v1049_v9 = vpack.c.bf16 %v651_v63, %v650_v61  ;;  %v583_v11 = vmul.f32 %v1268_v20, %v533_v7  ;;  %v1137_v13 = vpop.f32.mrb[14].mxu1  ;;  %v608_v14 = vadd.f32 %v1273_v22, %v569_v4  ;;  %v472_v18 = vpop.f32.mrb[15].mxu0 }
 0x101   : > { %1070 = vst [vmem:[%s1296_s8 + $0x28] sm:$0xff] %v1014_v2   ;;  %1078 = vst [vmem:[%s1296_s8 + $0x68] sm:$0xff] %v1054_v3   ;;  %v624_v15 = vadd.f32 %v1273_v22, %v585_v5  ;;  %v570_v16 = vmul.f32 %v1121_v12, %v1268_v20  ;;  %v586_v17 = vmul.f32 %v1137_v13, %v1268_v20  ;;  %v536_v19 = vpop.f32.mrb[15].mxu1 }
 0x102   : > { %1069 = vst [vmem:[%s1296_s8 + $0x20] sm:$0xff] %v1009_v8   ;;  %1077 = vst [vmem:[%s1296_s8 + $0x60] sm:$0xff] %v1049_v9   ;;  %v606_v21 = vadd.f32 %v1273_v22, %v567_v10  ;;  %v622_v23 = vadd.f32 %v1273_v22, %v583_v11  ;;  %v568_v24 = vmul.f32 %v1268_v20, %v472_v18  ;;  %v640_v30 = vmax.f32 %v608_v14, 0.0 }
 0x103   : > { %v584_v25 = vmul.f32 %v1268_v20, %v536_v19  ;;  %v609_v26 = vadd.f32 %v1273_v22, %v570_v16  ;;  %v625_v27 = vadd.f32 %v1273_v22, %v586_v17  ;;  %v656_v31 = vmax.f32 %v624_v15, 0.0 }
 0x104   : > { %v607_v28 = vadd.f32 %v1273_v22, %v568_v24  ;;  %v638_v34 = vmax.f32 %v606_v21, 0.0  ;;  %v654_v35 = vmax.f32 %v622_v23, 0.0 }
 0x105   : > { %v623_v29 = vadd.f32 %v1273_v22, %v584_v25  ;;  %v641_v32 = vmax.f32 %v609_v26, 0.0  ;;  %v657_v33 = vmax.f32 %v625_v27, 0.0 }
 0x106   : > { %v639_v36 = vmax.f32 %v607_v28, 0.0 }
 0x107   : > { %v655_v20 = vmax.f32 %v623_v29, 0.0  ;;  %v1024_v37 = vpack.c.bf16 %v641_v32, %v640_v30  ;;  %v1064_v38 = vpack.c.bf16 %v657_v33, %v656_v31 }
 0x108   : > { %v1019_v39 = vpack.c.bf16 %v639_v36, %v638_v34 }
 0x109   : > { %v1059_v40 = vpack.c.bf16 %v655_v20, %v654_v35  ;;  %1072 = vst [vmem:[%s1296_s8 + $0x38] sm:$0xff] %v1024_v37   ;;  %1080 = vst [vmem:[%s1296_s8 + $0x78] sm:$0xff] %v1064_v38  }
 0x10a   : > { %1071 = vst [vmem:[%s1296_s8 + $0x30] sm:$0xff] %v1019_v39  }
 0x10b   : > { %1079 = vst [vmem:[%s1296_s8 + $0x70] sm:$0xff] %v1059_v40  }
 0x10c PF: > { %s14_s15 = sadd.s32 1, %s1179_s15  }
 0x10d   : > { %p11_p4 = scmp.ge.s32.totalorder %s14_s15, 4  }
 0x10f   :  { %13 = sbr.rel (!%p11_p4) target bundleno = 1 (0x1), region = 66 }

// kernel: residual_conv_unit_sphe.3
= control target key start
LH: loop header
LB: loop body
LE: loop exit
PB: predicated region body
PF: predicated region fallthrough
CT: control target
= control target key end

     0   :  { %s1130_s18 = smov 0   ;;  %s1367_s0 = inlined_call_operand.vmem [shape: bf16[512,36], index: 0, kind: input, shape index: {}]   ;;  %s1368_s1 = inlined_call_operand.vmem [shape: bf16[36,128], index: 1, kind: input, shape index: {}]   ;;  %s1369_s2 = inlined_call_operand.vmem [shape: f32[1,128], index: 2, kind: input, shape index: {}]   ;;  %s1370_s3 = inlined_call_operand.vmem [shape: f32[1,128], index: 3, kind: input, shape index: {}]   ;;  %s1371_s4 = inlined_call_operand.vmem [shape: bf16[512,128], index: 4, kind: input, shape index: {}]   ;;  %s1372_s5 = inlined_call_operand.vmem [shape: f32[512,128], index: 5, kind: output, shape index: {}]  }
   0x1 LB: > { %s871_s19 = sadd.s32 4294967295, %s1098_s18   ;;  %p875_p0 = scmp.ge.s32.totalorder %s1098_s18, 1  ;;  %s1098_s18 = sphi %s1130_s18, %s15_s18  }
   0x2   : > { %p199_p1 = scmp.lt.s32.totalorder %s1098_s18, 3 }
   0x4   : > { %p200_p2 = pnand %p875_p0, %p199_p1 }
   0x5   : > { %v1073_v0 = vld [vmem:[%s1368_s1] sm:$0xff] (!%p200_p2)   ;;  %v1074_v1 = vld [vmem:[%s1368_s1 + $0x8] sm:$0xff] (!%p200_p2)   ;;  %s876_s24 = sshll.u32 (!%p200_p2), %s871_s19, 5  ;;  %v1075_v2 = vld [vmem:[%s1368_s1 + $0x10] ss:$0 sps:$4 sm:$0x33] (!%p200_p2)  }
   0x6   : > { %203 = sbr.rel (%p200_p2) target bundleno = 265 (0x109), region = 40  ;;  %1019 = vmatprep.subr.bf16.mxu0 (!%p200_p2), %v1073_v0  ;;  %1057 = vmatprep.subr.bf16.mxu1 (!%p200_p2), %v1073_v0  ;;  %p233_p3 = scmp.lt.s32.totalorder (!%p200_p2), %s876_s24, 63  ;;  %vm432_vm0 = vcmask (!%p200_p2), 1041408   ;;  %vm383_vm1 = vcmask (!%p200_p2), 293888   ;;  %v1203_v24 = vld [vmem:[%s1369_s2] ss:$0 sm:$0xff] (!%p200_p2) }
   0x7   : > { %1020 = vmatpush3.bf16.msra.mxu0 (!%p200_p2), %v1073_v0  ;;  %1060 = vmatpush3.bf16.msra.mxu1 (!%p200_p2), %v1073_v0  ;;  %v434_v3 = vsel (!%p200_p2), %vm432_vm0, %v1075_v2, 0  ;;  %v1208_v26 = vld [vmem:[%s1370_s3] ss:$0 sm:$0xff] (!%p200_p2) }
   0x8   : > { %1021 = vmatprep.subr.bf16.mxu0 (!%p200_p2), %v1074_v1  ;;  %1058 = vmatprep.subr.bf16.mxu1 (!%p200_p2), %v1074_v1 }
   0xb   : > { %1022 = vmatpush3.bf16.msra.mxu0 (!%p200_p2), %v1074_v1  ;;  %1061 = vmatpush3.bf16.msra.mxu1 (!%p200_p2), %v1074_v1 }
   0xc   : > { %1063 = vmatprep.subr.msk.bf16.mxu0 (!%p200_p2), %vm432_vm0, %v1075_v2  ;;  %1064 = vmatprep.subr.msk.bf16.mxu1 (!%p200_p2), %vm432_vm0, %v1075_v2 }
   0xd   : > { %s1374_s24 = smov (!%p233_p3, %s876_s24), 63 }
   0xe   : > { %s877_s27 = sshll.u32 %s1374_s24, 2  ;;  %s881_s13 = sshll.u32 %s1374_s24, 3 }
   0xf   : > { %s1155_s30 = scalar_lea.vmem %s1367_s0, %s877_s27  ;;  %1024 = vmatpush3.bf16.msra.mxu0 %v434_v3  ;;  %1062 = vmatpush3.bf16.msra.mxu1 %v434_v3  ;;  %s1194_s8 = scalar_lea.vmem %s1371_s4, %s877_s27 }
  0x10   : > { %v1076_v4 = vld [vmem:[%s1155_s30] sm:$0xff]   ;;  %v1078_v6 = vld [vmem:[%s1155_s30 + $0x8] sm:$0xff]   ;;  %v1080_v8 = vld [vmem:[%s1155_s30 + $0x10] sm:$0xff]   ;;  %s1222_s16 = scalar_lea.vmem %s1372_s5, %s881_s13 }
  0x11   : > { %v1077_v5 = vld [vmem:[%s1155_s30 + $0x40] sm:$0xff]   ;;  %1025 = vmatprep.mubr.msk.bf16.mxu0 %vm383_vm1, %v1076_v4  ;;  %v1079_v7 = vld [vmem:[%s1155_s30 + $0x48] sm:$0xff]   ;;  %v1081_v9 = vld [vmem:[%s1155_s30 + $0x50] sm:$0xff]  }
  0x12   : > { %1041 = vmatprep.mubr.msk.bf16.mxu1 %vm383_vm1, %v1077_v5  ;;  %1026 = vmatmul.mubr.msk.bf16.vlgmr.msra.gmra.mrb[0].mxu0 %vm383_vm1, %v1078_v6  ;;  %v1082_v10 = vld [vmem:[%s1155_s30 + $0x18] sm:$0xff]   ;;  %v1084_v12 = vld [vmem:[%s1155_s30 + $0x20] sm:$0xff]   ;;  %v1086_v14 = vld [vmem:[%s1155_s30 + $0x28] sm:$0xff]  }
  0x13   : > { %1042 = vmatmul.mubr.msk.bf16.vlgmr.msra.gmra.mrb[0].mxu1 %vm383_vm1, %v1079_v7  ;;  %1029 = vmatprep.mubr.msk.bf16.mxu0 %vm383_vm1, %v1080_v8  ;;  %v1083_v11 = vld [vmem:[%s1155_s30 + $0x58] sm:$0xff]   ;;  %v1085_v13 = vld [vmem:[%s1155_s30 + $0x60] sm:$0xff]   ;;  %v1087_v15 = vld [vmem:[%s1155_s30 + $0x68] sm:$0xff]  }
  0x14   : > { %1045 = vmatprep.mubr.msk.bf16.mxu1 %vm383_vm1, %v1081_v9  ;;  %v1088_v16 = vld [vmem:[%s1155_s30 + $0x30] sm:$0xff]   ;;  %v1090_v18 = vld [vmem:[%s1155_s30 + $0x38] sm:$0xff]   ;;  %v985_v20 = vld [vmem:[%s1194_s8 + $0x8] sm:$0xff]  }
  0x15   : > { %v1089_v17 = vld [vmem:[%s1155_s30 + $0x70] sm:$0xff]   ;;  %v1091_v19 = vld [vmem:[%s1155_s30 + $0x78] sm:$0xff]   ;;  %v993_v21 = vld [vmem:[%s1194_s8 + $0x48] sm:$0xff]   ;;  %v927_v27 = vunpack.c.l.bf16 %v985_v20  ;;  %v928_v36 = vunpack.c.h.bf16 %v985_v20 }
  0x16   : > { %v922_v22 = vld [vmem:[%s1194_s8] sm:$0xff]   ;;  %v959_v29 = vunpack.c.l.bf16 %v993_v21  ;;  %v960_v37 = vunpack.c.h.bf16 %v993_v21  ;;  %v1229_v54 = vld [vmem:[%s1194_s8 + $0x18] sm:$0xff]   ;;  %v1237_v60 = vld [vmem:[%s1194_s8 + $0x10] sm:$0xff]  }
  0x17   : > { %v992_v23 = vld [vmem:[%s1194_s8 + $0x40] sm:$0xff]   ;;  %v923_v30 = vunpack.c.l.bf16 %v922_v22  ;;  %v924_v42 = vunpack.c.h.bf16 %v922_v22  ;;  %v1232_v55 = vld [vmem:[%s1194_s8 + $0x58] sm:$0xff]   ;;  %v1240_v61 = vld [vmem:[%s1194_s8 + $0x50] sm:$0xff]   ;;  %v935_v4 = vunpack.c.l.bf16 %v1229_v54  ;;  %v932_v22 = vunpack.c.h.bf16 %v1237_v60 }
  0x18   : > { %v955_v31 = vunpack.c.l.bf16 %v992_v23  ;;  %v956_v43 = vunpack.c.h.bf16 %v992_v23  ;;  %v967_v5 = vunpack.c.l.bf16 %v1232_v55  ;;  %v964_v23 = vunpack.c.h.bf16 %v1240_v61 }
  0x1a   : > { %1030 = vmatmul.mubr.msk.bf16.gmra.mrb[4].mxu0 %vm383_vm1, %v1082_v10  ;;  %v931_v10 = vunpack.c.l.bf16 %v1237_v60 }
  0x1b   : > { %1046 = vmatmul.mubr.msk.bf16.gmra.mrb[4].mxu1 %vm383_vm1, %v1083_v11  ;;  %1033 = vmatprep.mubr.msk.bf16.mxu0 %vm383_vm1, %v1084_v12  ;;  %v963_v11 = vunpack.c.l.bf16 %v1240_v61 }
  0x1c   : > { %1049 = vmatprep.mubr.msk.bf16.mxu1 %vm383_vm1, %v1085_v13 }
  0x22   : > { %1034 = vmatmul.mubr.msk.bf16.gmra.mrb[8].mxu0 %vm383_vm1, %v1086_v14 }
  0x23   : > { %1050 = vmatmul.mubr.msk.bf16.gmra.mrb[8].mxu1 %vm383_vm1, %v1087_v15  ;;  %1037 = vmatprep.mubr.msk.bf16.mxu0 %vm383_vm1, %v1088_v16  ;;  %v936_v16 = vunpack.c.h.bf16 %v1229_v54 }
  0x24   : > { %1053 = vmatprep.mubr.msk.bf16.mxu1 %vm383_vm1, %v1089_v17  ;;  %v968_v17 = vunpack.c.h.bf16 %v1232_v55 }
  0x2a   : > { %1038 = vmatmul.mubr.msk.bf16.gmra.mrb[12].mxu0 %vm383_vm1, %v1090_v18 }
  0x2b   : > { %1054 = vmatmul.mubr.msk.bf16.gmra.mrb[12].mxu1 %vm383_vm1, %v1091_v19 }
  0xe5   : > { %v1027_v25 = vpop.f32.mrb[0].mxu0 }
  0xe6   : > { %v1043_v28 = vpop.f32.mrb[0].mxu1  ;;  %v606_v32 = vmul.f32 %v1027_v25, %v1203_v24  ;;  %v470_v34 = vpop.f32.mrb[1].mxu0 }
  0xe7   : > { %v622_v33 = vmul.f32 %v1043_v28, %v1203_v24  ;;  %v534_v35 = vpop.f32.mrb[1].mxu1  ;;  %v604_v38 = vmul.f32 %v1203_v24, %v470_v34  ;;  %v1028_v40 = vpop.f32.mrb[2].mxu0 }
  0xe8   : > { %v620_v39 = vmul.f32 %v1203_v24, %v534_v35  ;;  %v1044_v41 = vpop.f32.mrb[2].mxu1  ;;  %v645_v44 = vadd.f32 %v1208_v26, %v606_v32  ;;  %v607_v46 = vmul.f32 %v1028_v40, %v1203_v24  ;;  %v473_v48 = vpop.f32.mrb[3].mxu0 }
  0xe9   : > { %v661_v45 = vadd.f32 %v1208_v26, %v622_v33  ;;  %v623_v47 = vmul.f32 %v1044_v41, %v1203_v24  ;;  %v537_v49 = vpop.f32.mrb[3].mxu1  ;;  %v643_v50 = vadd.f32 %v1208_v26, %v604_v38  ;;  %v605_v52 = vmul.f32 %v1203_v24, %v473_v48 }
  0xea   : > { %v659_v51 = vadd.f32 %v1208_v26, %v620_v39  ;;  %v621_v53 = vmul.f32 %v1203_v24, %v537_v49  ;;  %v741_v56 = vadd.f32 %v927_v27, %v645_v44  ;;  %v646_v58 = vadd.f32 %v1208_v26, %v607_v46 }
  0xeb   : > { %v757_v57 = vadd.f32 %v959_v29, %v661_v45  ;;  %v662_v59 = vadd.f32 %v1208_v26, %v623_v47  ;;  %v739_v62 = vadd.f32 %v923_v30, %v643_v50  ;;  %v644_v0 = vadd.f32 %v1208_v26, %v605_v52 }
  0xec   : > { %v755_v63 = vadd.f32 %v955_v31, %v659_v51  ;;  %v660_v1 = vadd.f32 %v1208_v26, %v621_v53  ;;  %773 = vst [vmem:[%s1222_s16 + $0x10] sm:$0xff] %v741_v56  ;;  %v742_v2 = vadd.f32 %v928_v36, %v646_v58  ;;  %v1273_v36 = vld [vmem:[%s1194_s8 + $0x28] sm:$0xff]  }
  0xed   : > { %789 = vst [vmem:[%s1222_s16 + $0x90] sm:$0xff] %v757_v57  ;;  %v758_v3 = vadd.f32 %v960_v37, %v662_v59  ;;  %771 = vst [vmem:[%s1222_s16] sm:$0xff] %v739_v62  ;;  %v740_v6 = vadd.f32 %v924_v42, %v644_v0  ;;  %v1031_v8 = vpop.f32.mrb[4].mxu0  ;;  %v1276_v37 = vld [vmem:[%s1194_s8 + $0x68] sm:$0xff]   ;;  %v1281_v42 = vld [vmem:[%s1194_s8 + $0x20] sm:$0xff]   ;;  %v943_v50 = vunpack.c.l.bf16 %v1273_v36  ;;  %v944_v62 = vunpack.c.h.bf16 %v1273_v36 }
  0xee   : > { %787 = vst [vmem:[%s1222_s16 + $0x80] sm:$0xff] %v755_v63  ;;  %v756_v7 = vadd.f32 %v956_v43, %v660_v1  ;;  %v1047_v9 = vpop.f32.mrb[4].mxu1  ;;  %774 = vst [vmem:[%s1222_s16 + $0x18] sm:$0xff] %v742_v2  ;;  %v610_v12 = vmul.f32 %v1031_v8, %v1203_v24  ;;  %v486_v14 = vpop.f32.mrb[5].mxu0  ;;  %v1284_v43 = vld [vmem:[%s1194_s8 + $0x60] sm:$0xff]   ;;  %v975_v51 = vunpack.c.l.bf16 %v1276_v37  ;;  %v939_v56 = vunpack.c.l.bf16 %v1281_v42 }
  0xef   : > { %790 = vst [vmem:[%s1222_s16 + $0x98] sm:$0xff] %v758_v3  ;;  %v626_v13 = vmul.f32 %v1047_v9, %v1203_v24  ;;  %v550_v15 = vpop.f32.mrb[5].mxu1  ;;  %772 = vst [vmem:[%s1222_s16 + $0x8] sm:$0xff] %v740_v6  ;;  %v608_v18 = vmul.f32 %v1203_v24, %v486_v14  ;;  %v1032_v20 = vpop.f32.mrb[6].mxu0  ;;  %v971_v57 = vunpack.c.l.bf16 %v1284_v43  ;;  %v976_v63 = vunpack.c.h.bf16 %v1276_v37 }
  0xf0   : > { %788 = vst [vmem:[%s1222_s16 + $0x88] sm:$0xff] %v756_v7  ;;  %v624_v19 = vmul.f32 %v1203_v24, %v550_v15  ;;  %v1048_v21 = vpop.f32.mrb[6].mxu1  ;;  %v649_v25 = vadd.f32 %v1208_v26, %v610_v12  ;;  %v611_v28 = vmul.f32 %v1032_v20, %v1203_v24  ;;  %v489_v30 = vpop.f32.mrb[7].mxu0 }
  0xf1   : > { %v665_v27 = vadd.f32 %v1208_v26, %v626_v13  ;;  %v627_v29 = vmul.f32 %v1048_v21, %v1203_v24  ;;  %v553_v31 = vpop.f32.mrb[7].mxu1  ;;  %v647_v32 = vadd.f32 %v1208_v26, %v608_v18  ;;  %v609_v34 = vmul.f32 %v1203_v24, %v489_v30 }
  0xf2   : > { %v663_v33 = vadd.f32 %v1208_v26, %v624_v19  ;;  %v625_v35 = vmul.f32 %v1203_v24, %v553_v31  ;;  %v745_v38 = vadd.f32 %v935_v4, %v649_v25  ;;  %v650_v40 = vadd.f32 %v1208_v26, %v611_v28 }
  0xf3   : > { %v761_v39 = vadd.f32 %v967_v5, %v665_v27  ;;  %v666_v41 = vadd.f32 %v1208_v26, %v627_v29  ;;  %v743_v44 = vadd.f32 %v931_v10, %v647_v32  ;;  %v648_v46 = vadd.f32 %v1208_v26, %v609_v34 }
  0xf4   : > { %v759_v45 = vadd.f32 %v963_v11, %v663_v33  ;;  %v664_v47 = vadd.f32 %v1208_v26, %v625_v35  ;;  %777 = vst [vmem:[%s1222_s16 + $0x30] sm:$0xff] %v745_v38  ;;  %v746_v48 = vadd.f32 %v936_v16, %v650_v40  ;;  %v940_v4 = vunpack.c.h.bf16 %v1281_v42  ;;  %v1317_v16 = vld [vmem:[%s1194_s8 + $0x38] sm:$0xff]  }
  0xf5   : > { %793 = vst [vmem:[%s1222_s16 + $0xb0] sm:$0xff] %v761_v39  ;;  %v762_v49 = vadd.f32 %v968_v17, %v666_v41  ;;  %775 = vst [vmem:[%s1222_s16 + $0x20] sm:$0xff] %v743_v44  ;;  %v744_v52 = vadd.f32 %v932_v22, %v648_v46  ;;  %v1035_v54 = vpop.f32.mrb[8].mxu0  ;;  %v972_v5 = vunpack.c.h.bf16 %v1284_v43  ;;  %v1320_v17 = vld [vmem:[%s1194_s8 + $0x78] sm:$0xff]   ;;  %v990_v22 = vld [vmem:[%s1194_s8 + $0x30] sm:$0xff]   ;;  %v951_v32 = vunpack.c.l.bf16 %v1317_v16 }
  0xf6   : > { %791 = vst [vmem:[%s1222_s16 + $0xa0] sm:$0xff] %v759_v45  ;;  %v760_v53 = vadd.f32 %v964_v23, %v664_v47  ;;  %v1051_v55 = vpop.f32.mrb[8].mxu1  ;;  %778 = vst [vmem:[%s1222_s16 + $0x38] sm:$0xff] %v746_v48  ;;  %v614_v58 = vmul.f32 %v1035_v54, %v1203_v24  ;;  %v502_v60 = vpop.f32.mrb[9].mxu0  ;;  %v998_v23 = vld [vmem:[%s1194_s8 + $0x70] sm:$0xff]   ;;  %v983_v33 = vunpack.c.l.bf16 %v1320_v17  ;;  %v947_v38 = vunpack.c.l.bf16 %v990_v22 }
  0xf7   : > { %794 = vst [vmem:[%s1222_s16 + $0xb8] sm:$0xff] %v762_v49  ;;  %v630_v59 = vmul.f32 %v1051_v55, %v1203_v24  ;;  %v566_v61 = vpop.f32.mrb[9].mxu1  ;;  %776 = vst [vmem:[%s1222_s16 + $0x28] sm:$0xff] %v744_v52  ;;  %v612_v0 = vmul.f32 %v1203_v24, %v502_v60  ;;  %v1036_v2 = vpop.f32.mrb[10].mxu0  ;;  %v979_v39 = vunpack.c.l.bf16 %v998_v23  ;;  %v952_v44 = vunpack.c.h.bf16 %v1317_v16 }
  0xf8   : > { %792 = vst [vmem:[%s1222_s16 + $0xa8] sm:$0xff] %v760_v53  ;;  %v628_v1 = vmul.f32 %v1203_v24, %v566_v61  ;;  %v1052_v3 = vpop.f32.mrb[10].mxu1  ;;  %v653_v6 = vadd.f32 %v1208_v26, %v614_v58  ;;  %v615_v8 = vmul.f32 %v1036_v2, %v1203_v24  ;;  %v505_v10 = vpop.f32.mrb[11].mxu0  ;;  %v984_v45 = vunpack.c.h.bf16 %v1320_v17 }
  0xf9   : > { %v669_v7 = vadd.f32 %v1208_v26, %v630_v59  ;;  %v631_v9 = vmul.f32 %v1052_v3, %v1203_v24  ;;  %v569_v11 = vpop.f32.mrb[11].mxu1  ;;  %v651_v12 = vadd.f32 %v1208_v26, %v612_v0  ;;  %v613_v14 = vmul.f32 %v1203_v24, %v505_v10 }
  0xfa   : > { %v667_v13 = vadd.f32 %v1208_v26, %v628_v1  ;;  %v629_v15 = vmul.f32 %v1203_v24, %v569_v11  ;;  %v749_v18 = vadd.f32 %v943_v50, %v653_v6  ;;  %v654_v20 = vadd.f32 %v1208_v26, %v615_v8 }
  0xfb   : > { %v765_v19 = vadd.f32 %v975_v51, %v669_v7  ;;  %v670_v21 = vadd.f32 %v1208_v26, %v631_v9  ;;  %v747_v25 = vadd.f32 %v939_v56, %v651_v12  ;;  %v652_v28 = vadd.f32 %v1208_v26, %v613_v14 }
  0xfc   : > { %v763_v27 = vadd.f32 %v971_v57, %v667_v13  ;;  %v668_v29 = vadd.f32 %v1208_v26, %v629_v15  ;;  %781 = vst [vmem:[%s1222_s16 + $0x50] sm:$0xff] %v749_v18  ;;  %v750_v30 = vadd.f32 %v944_v62, %v654_v20  ;;  %v948_v50 = vunpack.c.h.bf16 %v990_v22 }
  0xfd   : > { %797 = vst [vmem:[%s1222_s16 + $0xd0] sm:$0xff] %v765_v19  ;;  %v766_v31 = vadd.f32 %v976_v63, %v670_v21  ;;  %779 = vst [vmem:[%s1222_s16 + $0x40] sm:$0xff] %v747_v25  ;;  %v748_v34 = vadd.f32 %v940_v4, %v652_v28  ;;  %v1039_v36 = vpop.f32.mrb[12].mxu0  ;;  %v980_v51 = vunpack.c.h.bf16 %v998_v23 }
  0xfe   : > { %795 = vst [vmem:[%s1222_s16 + $0xc0] sm:$0xff] %v763_v27  ;;  %v764_v35 = vadd.f32 %v972_v5, %v668_v29  ;;  %v1055_v37 = vpop.f32.mrb[12].mxu1  ;;  %782 = vst [vmem:[%s1222_s16 + $0x58] sm:$0xff] %v750_v30  ;;  %v618_v40 = vmul.f32 %v1039_v36, %v1203_v24  ;;  %v518_v42 = vpop.f32.mrb[13].mxu0 }
  0xff   : > { %798 = vst [vmem:[%s1222_s16 + $0xd8] sm:$0xff] %v766_v31  ;;  %v634_v41 = vmul.f32 %v1055_v37, %v1203_v24  ;;  %v582_v43 = vpop.f32.mrb[13].mxu1  ;;  %780 = vst [vmem:[%s1222_s16 + $0x48] sm:$0xff] %v748_v34  ;;  %v616_v46 = vmul.f32 %v1203_v24, %v518_v42  ;;  %v1040_v48 = vpop.f32.mrb[14].mxu0 }
 0x100   : > { %796 = vst [vmem:[%s1222_s16 + $0xc8] sm:$0xff] %v764_v35  ;;  %v632_v47 = vmul.f32 %v1203_v24, %v582_v43  ;;  %v1056_v49 = vpop.f32.mrb[14].mxu1  ;;  %v657_v52 = vadd.f32 %v1208_v26, %v618_v40  ;;  %v619_v54 = vmul.f32 %v1040_v48, %v1203_v24  ;;  %v521_v56 = vpop.f32.mrb[15].mxu0 }
 0x101   : > { %v673_v53 = vadd.f32 %v1208_v26, %v634_v41  ;;  %v635_v55 = vmul.f32 %v1056_v49, %v1203_v24  ;;  %v585_v57 = vpop.f32.mrb[15].mxu1  ;;  %v655_v58 = vadd.f32 %v1208_v26, %v616_v46  ;;  %v617_v60 = vmul.f32 %v1203_v24, %v521_v56 }
 0x102   : > { %v671_v59 = vadd.f32 %v1208_v26, %v632_v47  ;;  %v633_v61 = vmul.f32 %v1203_v24, %v585_v57  ;;  %v753_v62 = vadd.f32 %v951_v32, %v657_v52  ;;  %v658_v0 = vadd.f32 %v1208_v26, %v619_v54 }
 0x103   : > { %v769_v63 = vadd.f32 %v983_v33, %v673_v53  ;;  %v674_v1 = vadd.f32 %v1208_v26, %v635_v55  ;;  %v751_v2 = vadd.f32 %v947_v38, %v655_v58  ;;  %v656_v4 = vadd.f32 %v1208_v26, %v617_v60 }
 0x104   : > { %v767_v3 = vadd.f32 %v979_v39, %v671_v59  ;;  %v672_v5 = vadd.f32 %v1208_v26, %v633_v61  ;;  %785 = vst [vmem:[%s1222_s16 + $0x70] sm:$0xff] %v753_v62  ;;  %v754_v6 = vadd.f32 %v952_v44, %v658_v0 }
 0x105   : > { %801 = vst [vmem:[%s1222_s16 + $0xf0] sm:$0xff] %v769_v63  ;;  %v770_v24 = vadd.f32 %v984_v45, %v674_v1  ;;  %783 = vst [vmem:[%s1222_s16 + $0x60] sm:$0xff] %v751_v2  ;;  %v752_v7 = vadd.f32 %v948_v50, %v656_v4 }
 0x106   : > { %799 = vst [vmem:[%s1222_s16 + $0xe0] sm:$0xff] %v767_v3  ;;  %v768_v8 = vadd.f32 %v980_v51, %v672_v5  ;;  %786 = vst [vmem:[%s1222_s16 + $0x78] sm:$0xff] %v754_v6 }
 0x107   : > { %802 = vst [vmem:[%s1222_s16 + $0xf8] sm:$0xff] %v770_v24  ;;  %784 = vst [vmem:[%s1222_s16 + $0x68] sm:$0xff] %v752_v7 }
 0x108   : > { %800 = vst [vmem:[%s1222_s16 + $0xe8] sm:$0xff] %v768_v8 }
 0x109 PF: > { %s15_s18 = sadd.s32 1, %s1098_s18  }
 0x10a   : > { %p12_p4 = scmp.ge.s32.totalorder %s15_s18, 4  }
 0x10c   :  { %14 = sbr.rel (!%p12_p4) target bundleno = 1 (0x1), region = 73 }

</bundles_post_ra>
